<compile_context>
chip_gen: v7x
topology: tpu7x:2x2x1
jax: 0.10.0
libtpu: 0.0.40
codegen_flags: <defaults>
</compile_context>

<pallas_src>
import functools

import jax
import jax.numpy as jnp
from jax.experimental import pallas as pl
from jax.experimental.pallas import tpu as pltpu

HIDDEN = 128
LANE = 128
MIN_TILE = 16        # bf16 sublane packing -> batch tile must be a multiple of 16


def _round_up(n, m):
    return ((n + m - 1) // m) * m


# ----------------------------------------------------------------------------- kernel
def noisy_dqn_kernel(x_ref, w1_ref, b1_ref, w2_ref, b2_ref, w3_ref, b3_ref, out_ref):
    # All weights are pre-fused bf16 (in, out) slabs resident in VMEM; biases are
    # f32 (1, out) rows.  Matmuls run on the MXU with f32 accumulation; bias add
    # and ReLU stay in f32; the inter-layer activation is cast to bf16 for the
    # next MXU pass.
    h = jnp.dot(x_ref[...], w1_ref[...], preferred_element_type=jnp.float32)
    h = jnp.maximum(h + b1_ref[...], 0.0)                       # fc1 + relu

    h = jnp.dot(h.astype(jnp.bfloat16), w2_ref[...],
                preferred_element_type=jnp.float32)
    h = jnp.maximum(h + b2_ref[...], 0.0)                       # fc2 + relu

    h = jnp.dot(h.astype(jnp.bfloat16), w3_ref[...],
                preferred_element_type=jnp.float32)
    out_ref[...] = (h + b3_ref[...]).astype(out_ref.dtype)      # fc3 (lane-dense slab)


# ----------------------------------------------------------------------------- wrapper
def noisy_dqn_forward(x, fused_fc1, fused_fc2, fused_fc3, action_size,
                      block_m=1024, out_dtype=jnp.bfloat16):
    """x: (B, state_size).  Each fused_fcN = (w_eff_bf16 (in,out_pad), b_eff_f32 (1,out_pad))."""
    B, S = x.shape
    w1, b1 = fused_fc1
    w2, b2 = fused_fc2
    w3, b3 = fused_fc3
    A_pad = w3.shape[1]                     # lane-dense (128-wide) action slab

    x = x.astype(jnp.bfloat16)              # halve x DMA; matmul runs in bf16 anyway

    # Batch tiling: big tiles to amortize per-grid-step overhead; when the batch
    # is small, split it ~in half (>=2 grid steps) so v7x megacore gets both TCs.
    if B >= 2 * block_m:
        tm = block_m
    else:
        tm = max(MIN_TILE, _round_up((B + 1) // 2, MIN_TILE))
    B_pad = _round_up(B, tm)
    if B_pad != B:
        x = jnp.pad(x, ((0, B_pad - B), (0, 0)))
    grid = (B_pad // tm,)

    def resident(arr):
        # Constant block index -> DMA'd into VMEM once, stays resident across
        # every grid step while the next x-tile DMA pipelines under the matmuls.
        return pl.BlockSpec(arr.shape, lambda i: (0,) * arr.ndim)

    in_specs = [pl.BlockSpec((tm, S), lambda i: (i, 0)),
                resident(w1), resident(b1),
                resident(w2), resident(b2),
                resident(w3), resident(b3)]

    flops = 2 * B_pad * (S * HIDDEN + HIDDEN * HIDDEN + HIDDEN * A_pad)
    bytes_accessed = (
        2 * B_pad * S                                           # bf16 x
        + 2 * (S * HIDDEN + HIDDEN * HIDDEN + HIDDEN * A_pad)   # bf16 effective weights (once)
        + 4 * (2 * HIDDEN + A_pad)                              # f32 biases (once)
        + jnp.dtype(out_dtype).itemsize * B_pad * A_pad         # output slab writeback
    )

    out = pl.pallas_call(
        noisy_dqn_kernel,
        out_shape=jax.ShapeDtypeStruct((B_pad, A_pad), out_dtype),
        grid_spec=pltpu.PrefetchScalarGridSpec(
            num_scalar_prefetch=0,
            grid=grid,
            in_specs=in_specs,
            out_specs=pl.BlockSpec((tm, A_pad), lambda i: (i, 0)),
        ),
        compiler_params=pltpu.CompilerParams(
            dimension_semantics=("parallel",)),
        cost_estimate=pl.CostEstimate(
            flops=int(flops), transcendentals=0, bytes_accessed=int(bytes_accessed)),
    )(x, w1, b1, w2, b2, w3, b3)
    return out[:B, :action_size]


# ----------------------------------------------------------------------------- params
def scale_noise(key, size):
    """PyTorch NoisyLayer._scale_noise: sign(x) * sqrt(|x|), x ~ N(0,1)."""
    x = jax.random.normal(key, (size,), dtype=jnp.float32)
    return jnp.sign(x) * jnp.sqrt(jnp.abs(x))


def init_noisy_layer(key, in_features, out_features, sigma_init=0.017, pad_out_to=None):
    """Mirrors NoisyLayer.__init__ + reset_noise (training mode).

    Returns (w_mu_T, w_sigma_T, eps_in, eps_out, b_mu, b_sigma) where
      w_mu_T / w_sigma_T     : (in_features, out_pad)  -- pre-transposed
      eps_in                 : (in_features, 1)
      eps_out, b_mu, b_sigma : (1, out_pad)
    Output columns >= out_features are zero-padded (zero weight, zero bias).
    """
    out_pad = out_features if pad_out_to is None else pad_out_to
    k_wmu, k_bmu, k_ein, k_eout = jax.random.split(key, 4)
    mu_range = 1.0 / jnp.sqrt(jnp.float32(in_features))

    w_mu = jax.random.uniform(k_wmu, (out_features, in_features), jnp.float32,
                              -mu_range, mu_range)
    w_sigma = jnp.full((out_features, in_features),
                       sigma_init / jnp.sqrt(jnp.float32(in_features)), jnp.float32)
    b_mu = jax.random.uniform(k_bmu, (out_features,), jnp.float32, -mu_range, mu_range)
    b_sigma = jnp.full((out_features,),
                       sigma_init / jnp.sqrt(jnp.float32(out_features)), jnp.float32)
    eps_in = scale_noise(k_ein, in_features)
    eps_out = scale_noise(k_eout, out_features)

    pad = out_pad - out_features
    w_mu = jnp.pad(w_mu, ((0, pad), (0, 0)))
    w_sigma = jnp.pad(w_sigma, ((0, pad), (0, 0)))
    b_mu = jnp.pad(b_mu, ((0, pad),))
    b_sigma = jnp.pad(b_sigma, ((0, pad),))
    eps_out = jnp.pad(eps_out, ((0, pad),))

    return (w_mu.T, w_sigma.T, eps_in[:, None], eps_out[None, :],
            b_mu[None, :], b_sigma[None, :])


def fuse_noisy_layer(params):
    """Pre-fuse the training-mode effective weight/bias ONCE per noise reset.

    weight = mu + sigma * (eps_out outer eps_in)  -> bf16 (in, out_pad)
    bias   = b_mu + b_sigma * eps_out             -> f32  (1, out_pad)
    """
    w_mu, w_sig, ein, eout, b_mu, b_sig = params
    w_eff = (w_mu + w_sig * (ein * eout)).astype(jnp.bfloat16)
    b_eff = (b_mu + b_sig * eout).astype(jnp.float32)
    return w_eff, b_eff


def reference_forward(x, p1, p2, p3, out_dtype=jnp.bfloat16):
    """Pure-JAX reference with the same bf16-weight / f32-accumulate recipe."""
    def layer(h, p):
        w, b = fuse_noisy_layer(p)
        return jnp.dot(h.astype(jnp.bfloat16), w,
                       preferred_element_type=jnp.float32) + b
    h = jnp.maximum(layer(x, p1), 0.0)
    h = jnp.maximum(layer(h, p2), 0.0)
    return layer(h, p3).astype(out_dtype)


# ----------------------------------------------------------------------------- main
if __name__ == "__main__":
    key = jax.random.PRNGKey(0)
    k_x1, k_x2, k1, k2, k3 = jax.random.split(key, 5)

    state_size, action_size = 16, 8
    A_pad = _round_up(action_size, LANE)      # 128-wide lane-dense output slab

    p1 = init_noisy_layer(k1, state_size, HIDDEN)
    p2 = init_noisy_layer(k2, HIDDEN, HIDDEN)
    p3 = init_noisy_layer(k3, HIDDEN, action_size, pad_out_to=A_pad)

    # Effective weights/biases fused once (conceptually once per reset_noise()).
    f1, f2, f3 = (fuse_noisy_layer(p) for p in (p1, p2, p3))

    fwd = jax.jit(functools.partial(noisy_dqn_forward,
                                    action_size=action_size, block_m=1024))

    # Small batch: tile = 16, single grid step.
    batch = 8
    x_small = jax.random.normal(k_x1, (batch, state_size), dtype=jnp.float32)
    out = jax.block_until_ready(fwd(x_small, f1, f2, f3))
    ref = reference_forward(x_small, p1, p2, p3)[:, :action_size]
    assert out.shape == (batch, action_size)
    assert jnp.allclose(out.astype(jnp.float32), ref.astype(jnp.float32),
                        atol=2e-2, rtol=2e-2), "small-batch mismatch"

    # Larger batch: tile ~ B/2 rounded to 16 -> 2 grid steps (exercises the grid
    # and the v7x megacore split path).
    batch2 = 200
    x_big = jax.random.normal(k_x2, (batch2, state_size), dtype=jnp.float32)
    out2 = jax.block_until_ready(fwd(x_big, f1, f2, f3))
    ref2 = reference_forward(x_big, p1, p2, p3)[:, :action_size]
    assert out2.shape == (batch2, action_size)
    assert jnp.allclose(out2.astype(jnp.float32), ref2.astype(jnp.float32),
                        atol=2e-2, rtol=2e-2), "multi-tile mismatch"

    print("KERNEL_OK")
</pallas_src>

<mosaic_0001>
module attributes {stable_mosaic.version = 11 : i64} {
  func.func @noisy_dqn_kernel(%arg0: i32, %arg1: memref<16x16xbf16, #tpu.memory_space<vmem>>, %arg2: memref<16x128xbf16, #tpu.memory_space<vmem>>, %arg3: memref<1x128xf32, #tpu.memory_space<vmem>>, %arg4: memref<128x128xbf16, #tpu.memory_space<vmem>>, %arg5: memref<1x128xf32, #tpu.memory_space<vmem>>, %arg6: memref<128x128xbf16, #tpu.memory_space<vmem>>, %arg7: memref<1x128xf32, #tpu.memory_space<vmem>>, %arg8: memref<16x128xbf16, #tpu.memory_space<vmem>>) attributes {dimension_semantics = [#tpu.dimension_semantics<parallel>], iteration_bounds = array<i64: 1>, scalar_prefetch = 0 : i64, scratch_operands = 0 : i64, tpu.core_type = #tpu.core_type<tc>, window_params = [{transform_indices = @transform_0, window_bounds = array<i64: 16, 16>}, {pipeline_mode = #tpu.pipeline_mode<synchronous>, transform_indices = @transform_1, window_bounds = array<i64: 16, 128>}, {pipeline_mode = #tpu.pipeline_mode<synchronous>, transform_indices = @transform_2, window_bounds = array<i64: 1, 128>}, {pipeline_mode = #tpu.pipeline_mode<synchronous>, transform_indices = @transform_3, window_bounds = array<i64: 128, 128>}, {pipeline_mode = #tpu.pipeline_mode<synchronous>, transform_indices = @transform_4, window_bounds = array<i64: 1, 128>}, {pipeline_mode = #tpu.pipeline_mode<synchronous>, transform_indices = @transform_5, window_bounds = array<i64: 128, 128>}, {pipeline_mode = #tpu.pipeline_mode<synchronous>, transform_indices = @transform_6, window_bounds = array<i64: 1, 128>}, {transform_indices = @transform_7, window_bounds = array<i64: 16, 128>}]} {
    %c0 = arith.constant 0 : index
    %c0_0 = arith.constant 0 : index
    %0 = vector.load %arg1[%c0, %c0_0] : memref<16x16xbf16, #tpu.memory_space<vmem>>, vector<16x16xbf16>
    %c0_1 = arith.constant 0 : index
    %c0_2 = arith.constant 0 : index
    %1 = vector.load %arg2[%c0_1, %c0_2] : memref<16x128xbf16, #tpu.memory_space<vmem>>, vector<16x128xbf16>
    %cst = arith.constant dense<0.000000e+00> : vector<16x128xf32>
    %2 = tpu.matmul %0, %1, %cst {dimension_numbers = #tpu.dot_dimension_numbers<[1], [0], [0], [1], [0, 0, 1, 1], [], []>} : vector<16x16xbf16>, vector<16x128xbf16>, vector<16x128xf32> -> vector<16x128xf32>
    %c0_3 = arith.constant 0 : index
    %c0_4 = arith.constant 0 : index
    %3 = vector.load %arg3[%c0_3, %c0_4] : memref<1x128xf32, #tpu.memory_space<vmem>>, vector<1x128xf32>
    %4 = vector.broadcast %3 : vector<1x128xf32> to vector<16x128xf32>
    %5 = arith.addf %2, %4 : vector<16x128xf32>
    %cst_5 = arith.constant 0.000000e+00 : f32
    %6 = vector.broadcast %cst_5 : f32 to vector<16x128xf32>
    %7 = arith.maximumf %5, %6 : vector<16x128xf32>
    %8 = arith.truncf %7 : vector<16x128xf32> to vector<16x128xbf16>
    %c0_6 = arith.constant 0 : index
    %c0_7 = arith.constant 0 : index
    %9 = vector.load %arg4[%c0_6, %c0_7] : memref<128x128xbf16, #tpu.memory_space<vmem>>, vector<128x128xbf16>
    %cst_8 = arith.constant dense<0.000000e+00> : vector<16x128xf32>
    %10 = tpu.matmul %8, %9, %cst_8 {dimension_numbers = #tpu.dot_dimension_numbers<[1], [0], [0], [1], [0, 0, 1, 1], [], []>} : vector<16x128xbf16>, vector<128x128xbf16>, vector<16x128xf32> -> vector<16x128xf32>
    %c0_9 = arith.constant 0 : index
    %c0_10 = arith.constant 0 : index
    %11 = vector.load %arg5[%c0_9, %c0_10] : memref<1x128xf32, #tpu.memory_space<vmem>>, vector<1x128xf32>
    %12 = vector.broadcast %11 : vector<1x128xf32> to vector<16x128xf32>
    %13 = arith.addf %10, %12 : vector<16x128xf32>
    %cst_11 = arith.constant 0.000000e+00 : f32
    %14 = vector.broadcast %cst_11 : f32 to vector<16x128xf32>
    %15 = arith.maximumf %13, %14 : vector<16x128xf32>
    %16 = arith.truncf %15 : vector<16x128xf32> to vector<16x128xbf16>
    %c0_12 = arith.constant 0 : index
    %c0_13 = arith.constant 0 : index
    %17 = vector.load %arg6[%c0_12, %c0_13] : memref<128x128xbf16, #tpu.memory_space<vmem>>, vector<128x128xbf16>
    %cst_14 = arith.constant dense<0.000000e+00> : vector<16x128xf32>
    %18 = tpu.matmul %16, %17, %cst_14 {dimension_numbers = #tpu.dot_dimension_numbers<[1], [0], [0], [1], [0, 0, 1, 1], [], []>} : vector<16x128xbf16>, vector<128x128xbf16>, vector<16x128xf32> -> vector<16x128xf32>
    %c0_15 = arith.constant 0 : index
    %c0_16 = arith.constant 0 : index
    %19 = vector.load %arg7[%c0_15, %c0_16] : memref<1x128xf32, #tpu.memory_space<vmem>>, vector<1x128xf32>
    %20 = vector.broadcast %19 : vector<1x128xf32> to vector<16x128xf32>
    %21 = arith.addf %18, %20 : vector<16x128xf32>
    %22 = arith.truncf %21 : vector<16x128xf32> to vector<16x128xbf16>
    %c0_17 = arith.constant 0 : index
    %c0_18 = arith.constant 0 : index
    %23 = vector.load %arg8[%c0_17, %c0_18] : memref<16x128xbf16, #tpu.memory_space<vmem>>, vector<16x128xbf16>
    tpu.vector_store %arg8[%c0_17, %c0_18], %22 {strides = array<i32>} : memref<16x128xbf16, #tpu.memory_space<vmem>>, vector<16x128xbf16>,
    return
  }
  func.func @transform_0(%arg0: i32) -> (i32, i32) {
    %c0_i32 = arith.constant 0 : i32
    %c0_i32_0 = arith.constant 0 : i32
    return %arg0, %c0_i32 : i32, i32
  }
  func.func @transform_1(%arg0: i32) -> (i32, i32) {
    %c0_i32 = arith.constant 0 : i32
    %c0_i32_0 = arith.constant 0 : i32
    %c0_i32_1 = arith.constant 0 : i32
    return %c0_i32, %c0_i32_0 : i32, i32
  }
  func.func @transform_2(%arg0: i32) -> (i32, i32) {
    %c0_i32 = arith.constant 0 : i32
    %c0_i32_0 = arith.constant 0 : i32
    %c0_i32_1 = arith.constant 0 : i32
    return %c0_i32, %c0_i32_0 : i32, i32
  }
  func.func @transform_3(%arg0: i32) -> (i32, i32) {
    %c0_i32 = arith.constant 0 : i32
    %c0_i32_0 = arith.constant 0 : i32
    %c0_i32_1 = arith.constant 0 : i32
    return %c0_i32, %c0_i32_0 : i32, i32
  }
  func.func @transform_4(%arg0: i32) -> (i32, i32) {
    %c0_i32 = arith.constant 0 : i32
    %c0_i32_0 = arith.constant 0 : i32
    %c0_i32_1 = arith.constant 0 : i32
    return %c0_i32, %c0_i32_0 : i32, i32
  }
  func.func @transform_5(%arg0: i32) -> (i32, i32) {
    %c0_i32 = arith.constant 0 : i32
    %c0_i32_0 = arith.constant 0 : i32
    %c0_i32_1 = arith.constant 0 : i32
    return %c0_i32, %c0_i32_0 : i32, i32
  }
  func.func @transform_6(%arg0: i32) -> (i32, i32) {
    %c0_i32 = arith.constant 0 : i32
    %c0_i32_0 = arith.constant 0 : i32
    %c0_i32_1 = arith.constant 0 : i32
    return %c0_i32, %c0_i32_0 : i32, i32
  }
  func.func @transform_7(%arg0: i32) -> (i32, i32) {
    %c0_i32 = arith.constant 0 : i32
    %c0_i32_0 = arith.constant 0 : i32
    return %arg0, %c0_i32 : i32, i32
  }
}

</mosaic_0001>

<bundles_post_ra>
// kernel: noisy_dqn_forward.1
= control target key start
LH: loop header
LB: loop body
LE: loop exit
PB: predicated region body
PF: predicated region fallthrough
CT: control target
= control target key end

     0   :  { %12 = vsyncpa [#allocation3], 0  ;;  %s645_s0 = inlined_call_operand.vmem [shape: bf16[16,16], index: 0, kind: input, shape index: {}]   ;;  %s646_s1 = inlined_call_operand.vmem [shape: bf16[16,128], index: 1, kind: input, shape index: {}]   ;;  %s647_s2 = inlined_call_operand.vmem [shape: f32[1,128], index: 2, kind: input, shape index: {}]   ;;  %s648_s3 = inlined_call_operand.hbm [shape: bf16[128,128], index: 3, kind: input, shape index: {}]   ;;  %s649_s4 = inlined_call_operand.vmem [shape: f32[1,128], index: 4, kind: input, shape index: {}]   ;;  %s650_s5 = inlined_call_operand.hbm [shape: bf16[128,128], index: 5, kind: input, shape index: {}]   ;;  %s651_s6 = inlined_call_operand.vmem [shape: f32[1,128], index: 6, kind: input, shape index: {}]   ;;  %s652_s7 = inlined_call_operand.vmem [shape: bf16[16,128], index: 7, kind: output, shape index: {}]  }
   0x1   :  { %13 = vsyncpa [#allocation5], 0  ;;  %s537_s24 = smov [#allocation2]   ;;  %s489_s28 = scalar_lea.hbm %s648_s3, 1024 }
   0x2   :  { %s25_s25 = sshll.u32 %s537_s24, 4  ;;  %p490_p0 = scmp.ne.s32.totalorder %s648_s3, %s489_s28  ;;  %s26_s25 = int_to_ptr.vmem [resolvable:$true] %s25_s25 }
   0x3   :  { %p493_p1 = scmp.lt.u32.totalorder %s489_s28, %s648_s3 }
   0x5   :  { %p495_p2 = pnand %p493_p1, %p490_p0 }
   0x7   :  { %498 = shalt.err (!%p495_p2)
}
   0x8   :  { %s499_s10 = scalar_lea.vmem %s26_s25, 1024  ;;  %p504_p4 = scmp.lt.s32.totalorder %s26_s25, %s26_s25 }
   0x9   :  { %p500_p3 = scmp.ne.s32.totalorder %s26_s25, %s499_s10  ;;  %p505_p5 = scmp.lt.s32.totalorder %s499_s10, %s499_s10 }
   0xb   :  { %p506_p6 = por %p505_p5, %p504_p4 }
   0xd   :  { %p507_p7 = pnand %p506_p6, %p500_p3 }
   0xf   :  { %510 = shalt.err (!%p507_p7)
}
  0x10   :  { %s538_s11 = smov 64   ;;  %s539_s12 = smov 4  }
  0x11   :  { %31 = dma.hbm_to_vmem [thread:$0]  %s648_s3, 1024, %s26_s25, [#allocation3], %s538_s11, %s538_s11, %s539_s12  }
  0x12   :  { %s540_s15 = smov [#allocation4]   ;;  %s511_s19 = scalar_lea.hbm %s650_s5, 1024 }
  0x13   :  { %s39_s16 = sshll.u32 %s540_s15, 4  ;;  %p512_p8 = scmp.ne.s32.totalorder %s650_s5, %s511_s19  ;;  %s40_s16 = int_to_ptr.vmem [resolvable:$true] %s39_s16 }
  0x14   :  { %p515_p9 = scmp.lt.u32.totalorder %s511_s19, %s650_s5 }
  0x16   :  { %p517_p10 = pnand %p515_p9, %p512_p8 }
  0x18   :  { %520 = shalt.err (!%p517_p10)
}
  0x19   :  { %s521_s24 = scalar_lea.vmem %s40_s16, 1024  ;;  %p526_p12 = scmp.lt.s32.totalorder %s40_s16, %s40_s16 }
  0x1a   :  { %p522_p11 = scmp.ne.s32.totalorder %s40_s16, %s521_s24  ;;  %p527_p13 = scmp.lt.s32.totalorder %s521_s24, %s521_s24 }
  0x1c   :  { %p528_p0 = por %p527_p13, %p526_p12 }
  0x1e   :  { %p529_p1 = pnand %p528_p0, %p522_p11 }
  0x20   :  { %532 = shalt.err (!%p529_p1)
}
  0x21   :  { %45 = dma.hbm_to_vmem [thread:$0]  %s650_s5, 1024, %s40_s16, [#allocation5], %s538_s11, %s538_s11, %s539_s12  }
  0x22   :  { %533 = dma.done.wait [#allocation3], 1024  }
  0x23   :  { %534 = vsyncadd [#allocation3], 4294966272 }
  0x24   :  { %535 = dma.done.wait [#allocation5], 1024  }
  0x25   :  { %536 = vsyncadd [#allocation5], 4294966272  ;;  %v541_v0 = vmov 0.0   ;;  %vm542_vm0 = vmmov 0   ;;  %v471_v1 = vld [vmem:[%s646_s1] sm:$0xff]   ;;  %vm77_vm1 = vcmask 130048  }
  0x26   :  { %419 = vmatprep.subr.bf16.mxu0 %v541_v0  ;;  %421 = vmatprep.mubr.msk.bf16.mxu0 %vm542_vm0, %v541_v0  ;;  %v472_v2 = vld [vmem:[%s645_s0] sm:$0xff]   ;;  %v474_v4 = vld [vmem:[#allocation2 + $0x8] sm:$0xff]   ;;  %v475_v5 = vld [vmem:[#allocation2 + $0x10] sm:$0xff]  }
  0x27   :  { %425 = vmatprep.subr.bf16.mxu1 %v541_v0  ;;  %441 = vmatprep.mubr.msk.bf16.mxu1 %vm542_vm0, %v541_v0  ;;  %v473_v3 = vld [vmem:[#allocation2] sm:$0xff]   ;;  %v476_v6 = vld [vmem:[#allocation2 + $0x18] sm:$0xff]   ;;  %v478_v8 = vld [vmem:[#allocation2 + $0x28] sm:$0xff]  }
  0x28   :  { %420 = vmatpush3.bf16.msra.mxu0 %v471_v1  ;;  %426 = vmatpush3.bf16.msra.mxu1 %v473_v3  ;;  %v477_v7 = vld [vmem:[#allocation2 + $0x20] sm:$0xff]   ;;  %v479_v9 = vld [vmem:[#allocation2 + $0x30] sm:$0xff]   ;;  %v480_v10 = vld [vmem:[#allocation2 + $0x38] sm:$0xff]  }
  0x29   :  { %445 = vmatprep.subr.bf16.mxu0 %v541_v0  ;;  %427 = vmatprep.subr.bf16.mxu1 %v541_v0  ;;  %v481_v11 = vld [vmem:[#allocation4] sm:$0xff]   ;;  %v482_v12 = vld [vmem:[#allocation4 + $0x8] sm:$0xff]   ;;  %v483_v13 = vld [vmem:[#allocation4 + $0x10] sm:$0xff]  }
  0x2a   :  { %v484_v14 = vld [vmem:[#allocation4 + $0x18] sm:$0xff]   ;;  %v485_v15 = vld [vmem:[#allocation4 + $0x20] sm:$0xff]   ;;  %v486_v16 = vld [vmem:[#allocation4 + $0x28] sm:$0xff]  }
  0x2b   :  { %422 = vmatmul.mubr.msk.bf16.vlgmr.msra.gmra.mrb[0].mxu0 %vm77_vm1, %v472_v2  ;;  %v368_v17 = vld [vmem:[%s647_s2] ss:$0 sm:$0xff]  ;;  %v487_v27 = vld [vmem:[#allocation4 + $0x30] sm:$0xff]   ;;  %v488_v28 = vld [vmem:[#allocation4 + $0x38] sm:$0xff]  }
  0x2c   :  { %461 = vmatprep.mubr.msk.bf16.mxu0 %vm542_vm0, %v541_v0  ;;  %428 = vmatpush3.bf16.msra.mxu1 %v474_v4  ;;  %v372_v29 = vld [vmem:[%s649_s4] ss:$0 sm:$0xff] }
  0x2d   :  { %429 = vmatprep.subr.bf16.mxu1 %v541_v0  ;;  %446 = vmatpush3.bf16.msra.mxu0 %v481_v11  ;;  %v381_v39 = vld [vmem:[%s651_s6] ss:$0 sm:$0xff] }
  0x2e   :  { %447 = vmatprep.subr.bf16.mxu0 %v541_v0 }
  0x30   :  { %430 = vmatpush3.bf16.msra.mxu1 %v475_v5 }
  0x31   :  { %431 = vmatprep.subr.bf16.mxu1 %v541_v0  ;;  %448 = vmatpush3.bf16.msra.mxu0 %v482_v12 }
  0x32   :  { %449 = vmatprep.subr.bf16.mxu0 %v541_v0 }
  0x34   :  { %432 = vmatpush3.bf16.msra.mxu1 %v476_v6 }
  0x35   :  { %433 = vmatprep.subr.bf16.mxu1 %v541_v0  ;;  %450 = vmatpush3.bf16.msra.mxu0 %v483_v13 }
  0x36   :  { %451 = vmatprep.subr.bf16.mxu0 %v541_v0 }
  0x38   :  { %434 = vmatpush3.bf16.msra.mxu1 %v477_v7 }
  0x39   :  { %435 = vmatprep.subr.bf16.mxu1 %v541_v0  ;;  %452 = vmatpush3.bf16.msra.mxu0 %v484_v14 }
  0x3a   :  { %453 = vmatprep.subr.bf16.mxu0 %v541_v0 }
  0x3c   :  { %436 = vmatpush3.bf16.msra.mxu1 %v478_v8 }
  0x3d   :  { %437 = vmatprep.subr.bf16.mxu1 %v541_v0  ;;  %454 = vmatpush3.bf16.msra.mxu0 %v485_v15 }
  0x3e   :  { %455 = vmatprep.subr.bf16.mxu0 %v541_v0 }
  0x40   :  { %438 = vmatpush3.bf16.msra.mxu1 %v479_v9 }
  0x41   :  { %439 = vmatprep.subr.bf16.mxu1 %v541_v0  ;;  %456 = vmatpush3.bf16.msra.mxu0 %v486_v16 }
  0x42   :  { %457 = vmatprep.subr.bf16.mxu0 %v541_v0 }
  0x44   :  { %440 = vmatpush3.bf16.msra.mxu1 %v480_v10 }
  0x45   :  { %458 = vmatpush3.bf16.msra.mxu0 %v487_v27 }
  0x46   :  { %459 = vmatprep.subr.bf16.mxu0 %v541_v0 }
  0x49   :  { %460 = vmatpush3.bf16.msra.mxu0 %v488_v28 }
  0xfe   :  { %v115_v18 = vpop.f32.mrb[0].mxu0 }
  0xff   :  { %v116_v19 = vadd.f32 %v368_v17, %v115_v18  ;;  %v423_v20 = vpop.f32.mrb[1].mxu0 }
 0x100   :  { %v118_v21 = vpop.f32.mrb[2].mxu0 }
 0x101   :  { %v119_v22 = vadd.f32 %v368_v17, %v118_v21  ;;  %v424_v23 = vpop.f32.mrb[3].mxu0  ;;  %v122_v24 = vmax.f32 %v116_v19, 0.0 }
 0x103   :  { %v123_v25 = vmax.f32 %v119_v22, 0.0 }
 0x105   :  { %v124_v26 = vpack.c.bf16 %v123_v25, %v122_v24 }
 0x107   :  { %442 = vmatmul.mubr.bf16.vlgmr.msra.gmra.mrb[0].mxu1 %v124_v26 }
 0x1da   :  { %v230_v30 = vpop.f32.mrb[0].mxu1 }
 0x1db   :  { %v231_v31 = vadd.f32 %v372_v29, %v230_v30  ;;  %v443_v32 = vpop.f32.mrb[1].mxu1 }
 0x1dc   :  { %v233_v33 = vpop.f32.mrb[2].mxu1 }
 0x1dd   :  { %v234_v34 = vadd.f32 %v372_v29, %v233_v33  ;;  %v444_v35 = vpop.f32.mrb[3].mxu1  ;;  %v237_v36 = vmax.f32 %v231_v31, 0.0 }
 0x1df   :  { %v238_v37 = vmax.f32 %v234_v34, 0.0 }
 0x1e1   :  { %v239_v38 = vpack.c.bf16 %v238_v37, %v237_v36 }
 0x1e3   :  { %462 = vmatmul.mubr.bf16.vlgmr.msra.gmra.mrb[4].mxu0 %v239_v38 }
 0x2b6   :  { %v345_v40 = vpop.f32.mrb[4].mxu0 }
 0x2b7   :  { %v463_v41 = vpop.f32.mrb[5].mxu0  ;;  %v346_v43 = vadd.f32 %v381_v39, %v345_v40 }
 0x2b8   :  { %v348_v42 = vpop.f32.mrb[6].mxu0 }
 0x2b9   :  { %v349_v44 = vadd.f32 %v381_v39, %v348_v42  ;;  %v464_v45 = vpop.f32.mrb[7].mxu0 }
 0x2bb   :  { %v397_v46 = vpack.c.bf16 %v349_v44, %v346_v43 }
 0x2bd   :  { %398 = vst [vmem:[%s652_s7] sm:$0xff] %v397_v46  }
 0x2be   :  { %366 = vsyncpa [#allocation3], 1 }
 0x2bf   :  { %367 = vsyncpa [#allocation5], 1 }

</bundles_post_ra>
